<compile_context>
chip_gen: v7x
topology: tpu7x:2x2x1
jax: 0.10.0
libtpu: 0.0.40
codegen_flags: <defaults>
</compile_context>

<pallas_src>
import jax
import jax.numpy as jnp
from jax.experimental import pallas as pl
from jax.experimental.pallas import tpu as pltpu

_LANE = 128
_SUBLANE = 8


def _round_up(v, m):
    return (v + m - 1) // m * m


# ---------------------------------------------------------------------------
# Pallas kernel:
#   logits = x @ W + b
#   probs  = sigmoid(logits)          (stable form, no inf intermediates)
#   sp     = softplus(logits)         (reused by log_probs / entropy glue)
# packed into one lane-dense output slab [logits | probs | softplus].
# ---------------------------------------------------------------------------
def _bernoulli_head_kernel(x_ref, w_ref, b_ref, out_ref):
    n_pad = w_ref.shape[1]

    x = x_ref[...]                                   # (TB, K)   f32
    w = w_ref[...]                                   # (K, Npad) f32
    # NOTE: once this head is compute-bound at large B, cast x/w to bf16 here
    # (keep preferred_element_type=f32) for the fast MXU path on v6e/v7x.
    logits = jnp.dot(x, w, preferred_element_type=jnp.float32) + b_ref[...]

    # Stable sigmoid / softplus using only exp/log/abs/max (exp arg <= 0).
    e = jnp.exp(-jnp.abs(logits))                    # in (0, 1]
    p_pos = 1.0 / (1.0 + e)
    probs = jnp.where(logits >= 0, p_pos, 1.0 - p_pos)
    softplus = jnp.maximum(logits, 0.0) + jnp.log(1.0 + e)

    # Three full-lane (128-wide) unmasked stores into a single output buffer.
    out_ref[:, 0:n_pad] = logits
    out_ref[:, n_pad:2 * n_pad] = probs
    out_ref[:, 2 * n_pad:3 * n_pad] = softplus


def bernoulli_head(x, w_pad, b_pad, num_outputs, *, max_batch_tile=512):
    """Run the fused linear + Bernoulli-stats head in Pallas.

    x:      (B, K) f32
    w_pad:  (K, N_pad) f32, N_pad a multiple of 128 (zero-padded columns)
    b_pad:  (1, N_pad) f32
    Returns (logits, probs, softplus_logits), each (B, num_outputs) f32.
    """
    x = x.astype(jnp.float32)
    B, K = x.shape
    Kw, n_pad = w_pad.shape
    assert K == Kw, "feature dim mismatch"
    assert n_pad % _LANE == 0, "weight must be padded to a multiple of 128 lanes"

    # Batch tile: multiple of 8 (sublane), capped so big batches pipeline and
    # tiny demo batches don't over-pad.
    tb = min(max_batch_tile, _round_up(B, _SUBLANE))
    b_padded = _round_up(B, tb)
    if b_padded != B:
        x = jnp.pad(x, ((0, b_padded - B), (0, 0)))

    grid = (b_padded // tb,)

    packed = pl.pallas_call(
        _bernoulli_head_kernel,
        out_shape=jax.ShapeDtypeStruct((b_padded, 3 * n_pad), jnp.float32),
        grid_spec=pltpu.PrefetchScalarGridSpec(
            num_scalar_prefetch=0,
            grid=grid,
            in_specs=[
                # x: tiled over batch, double-buffered by the pipeline.
                pl.BlockSpec((tb, K), lambda i: (i, 0)),
                # weight / bias: same block every step -> VMEM-resident.
                pl.BlockSpec((K, n_pad), lambda i: (0, 0)),
                pl.BlockSpec((1, n_pad), lambda i: (0, 0)),
            ],
            out_specs=pl.BlockSpec((tb, 3 * n_pad), lambda i: (i, 0)),
        ),
        compiler_params=pltpu.CompilerParams(
            # Batch axis is embarrassingly parallel (v7x: shard across 2 TCs).
            dimension_semantics=("parallel",),
        ),
    )(x, w_pad, b_pad)

    n = num_outputs
    logits = packed[:B, 0:n]
    probs = packed[:B, n_pad:n_pad + n]
    softplus = packed[:B, 2 * n_pad:2 * n_pad + n]
    return logits, probs, softplus


# ---------------------------------------------------------------------------
# FixedBernoulli distribution glue (torch.distributions.Bernoulli semantics,
# built entirely from the kernel outputs — no extra transcendentals).
# ---------------------------------------------------------------------------
class FixedBernoulli:
    def __init__(self, logits, probs, softplus_logits):
        self.logits = logits
        self.probs = probs
        self._softplus = softplus_logits

    def log_probs(self, actions):
        # per-element Bernoulli log_prob: a*logits - softplus(logits)
        lp = actions * self.logits - self._softplus
        return lp.reshape(actions.shape[0], -1).sum(-1)[:, None]

    def entropy(self):
        # softplus(logits) - logits * sigmoid(logits), summed over outputs
        return (self._softplus - self.logits * self.probs).sum(-1)

    def mode(self):
        return (self.probs > 0.5).astype(jnp.float32)


# ---------------------------------------------------------------------------
# Module: Bernoulli (linear head, orthogonal init, gain=0.01, zero bias).
# Weights are stored pre-transposed and pre-padded to 128 lanes so the per-call
# path does no layout work.
# ---------------------------------------------------------------------------
class Bernoulli:
    def __init__(self, num_inputs, num_outputs, use_orthogonal=True, gain=0.01,
                 key=jax.random.PRNGKey(0)):
        self.num_outputs = num_outputs
        # Orthogonal init (like nn.init.orthogonal_) scaled by gain; plain JAX
        # at construction time — not a kernel concern.
        rows, cols = num_outputs, num_inputs
        a = jax.random.normal(key, (max(rows, cols), min(rows, cols)),
                              dtype=jnp.float32)
        q, r = jnp.linalg.qr(a)
        q = q * jnp.sign(jnp.diag(r))          # make decomposition unique
        if rows < cols:
            q = q.T
        w = gain * q[:rows, :cols]             # (num_outputs, num_inputs)

        n_pad = _round_up(num_outputs, _LANE)
        w_t = jnp.asarray(w.T, dtype=jnp.float32)              # (K, N)
        self.w_pad = jnp.pad(w_t, ((0, 0), (0, n_pad - num_outputs)))
        self.b_pad = jnp.zeros((1, n_pad), dtype=jnp.float32)

    def __call__(self, x):
        logits, probs, softplus = bernoulli_head(
            x, self.w_pad, self.b_pad, self.num_outputs)
        return FixedBernoulli(logits, probs, softplus)


if __name__ == "__main__":
    key = jax.random.PRNGKey(0)
    k_x, k_w = jax.random.split(key)

    B, num_inputs, num_outputs = 8, 32, 16
    x = jax.random.normal(k_x, (B, num_inputs), dtype=jnp.float32)

    head = Bernoulli(num_inputs, num_outputs, use_orthogonal=True, gain=0.01,
                     key=k_w)
    dist = head(x)

    jax.block_until_ready(dist.logits)
    jax.block_until_ready(dist.probs)

    # sanity check against plain-JAX reference
    w_t = head.w_pad[:, :num_outputs]
    ref_logits = x @ w_t + head.b_pad[:, :num_outputs]
    ref_probs = jax.nn.sigmoid(ref_logits)
    assert jnp.allclose(dist.logits, ref_logits, atol=1e-5, rtol=1e-5)
    assert jnp.allclose(dist.probs, ref_probs, atol=1e-5, rtol=1e-5)

    # distribution methods (cheap glue on fused kernel outputs)
    actions = (jax.random.uniform(key, (B, num_outputs)) > 0.5).astype(jnp.float32)
    lp = jax.block_until_ready(dist.log_probs(actions))
    ent = jax.block_until_ready(dist.entropy())
    mode = jax.block_until_ready(dist.mode())

    ref_lp = (actions * ref_logits - jax.nn.softplus(ref_logits)).sum(-1)[:, None]
    ref_ent = (jax.nn.softplus(ref_logits) - ref_logits * ref_probs).sum(-1)
    assert jnp.allclose(lp, ref_lp, atol=1e-4, rtol=1e-4)
    assert jnp.allclose(ent, ref_ent, atol=1e-4, rtol=1e-4)
    assert jnp.array_equal(mode, (ref_probs > 0.5).astype(jnp.float32))

    print("KERNEL_OK")
</pallas_src>

<mosaic_0001>
module attributes {stable_mosaic.version = 11 : i64} {
  func.func @_bernoulli_head_kernel(%arg0: i32, %arg1: memref<8x32xf32, #tpu.memory_space<vmem>>, %arg2: memref<32x128xf32, #tpu.memory_space<vmem>>, %arg3: memref<1x128xf32, #tpu.memory_space<vmem>>, %arg4: memref<8x384xf32, #tpu.memory_space<vmem>>) attributes {dimension_semantics = [#tpu.dimension_semantics<parallel>], iteration_bounds = array<i64: 1>, scalar_prefetch = 0 : i64, scratch_operands = 0 : i64, tpu.core_type = #tpu.core_type<tc>, window_params = [{transform_indices = @transform_0, window_bounds = array<i64: 8, 32>}, {pipeline_mode = #tpu.pipeline_mode<synchronous>, transform_indices = @transform_1, window_bounds = array<i64: 32, 128>}, {pipeline_mode = #tpu.pipeline_mode<synchronous>, transform_indices = @transform_2, window_bounds = array<i64: 1, 128>}, {transform_indices = @transform_3, window_bounds = array<i64: 8, 384>}]} {
    %c0 = arith.constant 0 : index
    %c0_0 = arith.constant 0 : index
    %0 = vector.load %arg1[%c0, %c0_0] : memref<8x32xf32, #tpu.memory_space<vmem>>, vector<8x32xf32>
    %c0_1 = arith.constant 0 : index
    %c0_2 = arith.constant 0 : index
    %1 = vector.load %arg2[%c0_1, %c0_2] : memref<32x128xf32, #tpu.memory_space<vmem>>, vector<32x128xf32>
    %cst = arith.constant dense<0.000000e+00> : vector<8x128xf32>
    %2 = tpu.matmul %0, %1, %cst {dimension_numbers = #tpu.dot_dimension_numbers<[1], [0], [0], [1], [0, 0, 1, 1], [], []>} : vector<8x32xf32>, vector<32x128xf32>, vector<8x128xf32> -> vector<8x128xf32>
    %c0_3 = arith.constant 0 : index
    %c0_4 = arith.constant 0 : index
    %3 = vector.load %arg3[%c0_3, %c0_4] : memref<1x128xf32, #tpu.memory_space<vmem>>, vector<1x128xf32>
    %4 = vector.broadcast %3 : vector<1x128xf32> to vector<8x128xf32>
    %5 = arith.addf %2, %4 : vector<8x128xf32>
    %6 = math.absf %5 : vector<8x128xf32>
    %cst_5 = arith.constant 0.000000e+00 : f32
    %7 = vector.broadcast %cst_5 : f32 to vector<8x128xf32>
    %8 = arith.subf %7, %6 : vector<8x128xf32>
    %9 = math.exp %8 : vector<8x128xf32>
    %cst_6 = arith.constant 1.000000e+00 : f32
    %10 = vector.broadcast %cst_6 : f32 to vector<8x128xf32>
    %11 = arith.addf %10, %9 : vector<8x128xf32>
    %cst_7 = arith.constant 1.000000e+00 : f32
    %12 = vector.broadcast %cst_7 : f32 to vector<8x128xf32>
    %13 = arith.divf %12, %11 : vector<8x128xf32>
    %cst_8 = arith.constant 0.000000e+00 : f32
    %14 = vector.broadcast %cst_8 : f32 to vector<8x128xf32>
    %15 = arith.cmpf oge, %5, %14 : vector<8x128xf32>
    %cst_9 = arith.constant 1.000000e+00 : f32
    %16 = vector.broadcast %cst_9 : f32 to vector<8x128xf32>
    %17 = arith.subf %16, %13 : vector<8x128xf32>
    %18 = arith.select %15, %13, %17 : vector<8x128xi1>, vector<8x128xf32>
    %cst_10 = arith.constant 0.000000e+00 : f32
    %19 = vector.broadcast %cst_10 : f32 to vector<8x128xf32>
    %20 = arith.maximumf %5, %19 : vector<8x128xf32>
    %cst_11 = arith.constant 1.000000e+00 : f32
    %21 = vector.broadcast %cst_11 : f32 to vector<8x128xf32>
    %22 = arith.addf %21, %9 : vector<8x128xf32>
    %23 = math.log %22 : vector<8x128xf32>
    %24 = arith.addf %20, %23 : vector<8x128xf32>
    %c0_12 = arith.constant 0 : index
    %c0_13 = arith.constant 0 : index
    %25 = vector.load %arg4[%c0_12, %c0_13] : memref<8x384xf32, #tpu.memory_space<vmem>>, vector<8x128xf32>
    tpu.vector_store %arg4[%c0_12, %c0_13], %5 {strides = array<i32>} : memref<8x384xf32, #tpu.memory_space<vmem>>, vector<8x128xf32>,
    %c0_14 = arith.constant 0 : index
    %c128 = arith.constant 128 : index
    %26 = vector.load %arg4[%c0_14, %c128] : memref<8x384xf32, #tpu.memory_space<vmem>>, vector<8x128xf32>
    tpu.vector_store %arg4[%c0_14, %c128], %18 {strides = array<i32>} : memref<8x384xf32, #tpu.memory_space<vmem>>, vector<8x128xf32>,
    %c0_15 = arith.constant 0 : index
    %c256 = arith.constant 256 : index
    %27 = vector.load %arg4[%c0_15, %c256] : memref<8x384xf32, #tpu.memory_space<vmem>>, vector<8x128xf32>
    tpu.vector_store %arg4[%c0_15, %c256], %24 {strides = array<i32>} : memref<8x384xf32, #tpu.memory_space<vmem>>, vector<8x128xf32>,
    return
  }
  func.func @transform_0(%arg0: i32) -> (i32, i32) {
    %c0_i32 = arith.constant 0 : i32
    %c0_i32_0 = arith.constant 0 : i32
    return %arg0, %c0_i32 : i32, i32
  }
  func.func @transform_1(%arg0: i32) -> (i32, i32) {
    %c0_i32 = arith.constant 0 : i32
    %c0_i32_0 = arith.constant 0 : i32
    %c0_i32_1 = arith.constant 0 : i32
    return %c0_i32, %c0_i32_0 : i32, i32
  }
  func.func @transform_2(%arg0: i32) -> (i32, i32) {
    %c0_i32 = arith.constant 0 : i32
    %c0_i32_0 = arith.constant 0 : i32
    %c0_i32_1 = arith.constant 0 : i32
    return %c0_i32, %c0_i32_0 : i32, i32
  }
  func.func @transform_3(%arg0: i32) -> (i32, i32) {
    %c0_i32 = arith.constant 0 : i32
    %c0_i32_0 = arith.constant 0 : i32
    return %arg0, %c0_i32 : i32, i32
  }
}

</mosaic_0001>

<bundles_post_ra>
// kernel: tpu_custom_call.1
= control target key start
LH: loop header
LB: loop body
LE: loop exit
PB: predicated region body
PF: predicated region fallthrough
CT: control target
= control target key end

     0   :  { %8 = vsyncpa [#allocation3], 0  ;;  %s344_s0 = inlined_call_operand.hbm [shape: f32[8,32], index: 0, kind: input, shape index: {}]   ;;  %s345_s1 = inlined_call_operand.hbm [shape: f32[32,128], index: 1, kind: input, shape index: {}]   ;;  %s346_s2 = inlined_call_operand.vmem [shape: f32[1,128], index: 2, kind: input, shape index: {}]   ;;  %s347_s3 = inlined_call_operand.hbm [shape: f32[8,384], index: 3, kind: output, shape index: {}]  }
   0x1   :  { %9 = vsyncpa [#allocation6], 0 }
   0x2   :  { %10 = vsyncpa [#allocation4], 0  ;;  %s270_s12 = smov [#allocation2]   ;;  %s271_s14 = smov [#allocation5]  }
   0x3   :  { %s17_s13 = sshll.u32 %s270_s12, 4  ;;  %s26_s15 = sshll.u32 %s271_s14, 4  ;;  %s18_s13 = int_to_ptr.vmem [resolvable:$true] %s17_s13  ;;  %s298_s15 = int_to_ptr.vmem [resolvable:$true] %s26_s15 }
   0x4   :  { %s198_s18 = scalar_lea.hbm %s344_s0, 128 }
   0x5   :  { %p199_p0 = scmp.ne.s32.totalorder %s344_s0, %s198_s18  ;;  %p202_p1 = scmp.lt.u32.totalorder %s198_s18, %s344_s0 }
   0x7   :  { %p204_p2 = pnand %p202_p1, %p199_p0 }
   0x9   :  { %207 = shalt.err (!%p204_p2)
}
   0xa   :  { %s208_s23 = scalar_lea.vmem %s18_s13, 128  ;;  %p213_p4 = scmp.lt.s32.totalorder %s18_s13, %s18_s13 }
   0xb   :  { %p209_p3 = scmp.ne.s32.totalorder %s18_s13, %s208_s23  ;;  %p214_p5 = scmp.lt.s32.totalorder %s208_s23, %s208_s23 }
   0xd   :  { %p215_p6 = por %p214_p5, %p213_p4 }
   0xf   :  { %p216_p7 = pnand %p215_p6, %p209_p3 }
  0x11   :  { %219 = shalt.err (!%p216_p7)
}
  0x12   :  { %20 = dma.hbm_to_vmem [thread:$0]  %s344_s0, 128, %s18_s13, [#allocation3]  }
  0x13   :  { %s220_s28 = scalar_lea.hbm %s345_s1, 512 }
  0x14   :  { %p221_p8 = scmp.ne.s32.totalorder %s345_s1, %s220_s28  ;;  %p224_p9 = scmp.lt.u32.totalorder %s220_s28, %s345_s1 }
  0x16   :  { %p226_p10 = pnand %p224_p9, %p221_p8 }
  0x18   :  { %229 = shalt.err (!%p226_p10)
}
  0x19   :  { %s230_s6 = scalar_lea.vmem %s298_s15, 512  ;;  %p235_p12 = scmp.lt.s32.totalorder %s298_s15, %s298_s15 }
  0x1a   :  { %p231_p11 = scmp.ne.s32.totalorder %s298_s15, %s230_s6  ;;  %p236_p13 = scmp.lt.s32.totalorder %s230_s6, %s230_s6 }
  0x1c   :  { %p237_p0 = por %p236_p13, %p235_p12 }
  0x1e   :  { %p238_p1 = pnand %p237_p0, %p231_p11 }
  0x20   :  { %241 = shalt.err (!%p238_p1)
}
  0x21   :  { %s272_s0 = smov 128   ;;  %s273_s7 = smov 8  }
  0x22   :  { %32 = dma.hbm_to_vmem [thread:$0]  %s345_s1, 512, %s298_s15, [#allocation6], %s272_s0, %s272_s0, %s273_s7  }
  0x23   :  { %264 = dma.done.wait [#allocation3], 128  }
  0x24   :  { %265 = vsyncadd [#allocation3], 4294967168 }
  0x25   :  { %266 = dma.done.wait [#allocation6], 512  }
  0x26   :  { %267 = vsyncadd [#allocation6], 4294966784  ;;  %v274_v0 = vmov 0.0|0.0   ;;  %vm275_vm0 = vmmov 0   ;;  %v276_v1 = vmov 0.0   ;;  %v42_v2 = vld [vmem:[#allocation5] sm:$0xff] }
  0x27   :  { %178 = vmatprep.subr.bf16.mxu0 %v274_v0  ;;  %175 = vmatprep.mubr.msk.f32.mxu0 %vm275_vm0, %v276_v1  ;;  %v43_v3 = vld [vmem:[#allocation5 + $0x8] sm:$0xff]  ;;  %v44_v4 = vld [vmem:[#allocation5 + $0x10] sm:$0xff]  ;;  %v45_v6 = vld [vmem:[#allocation5 + $0x18] sm:$0xff]  ;;  %vm53_vm1 = vcmask 261120   ;;  %s277_s11 = smov [#allocation7]  }
  0x28   :  { %v179_v5 = vpack.c.bf16 %v43_v3, %v42_v2  ;;  %v182_v7 = vpack.c.bf16 %v45_v6, %v44_v4  ;;  %v41_v8 = vld [vmem:[#allocation2] sm:$0xff]  ;;  %s150_s12 = sshll.u32 %s277_s11, 4  ;;  %s151_s12 = int_to_ptr.vmem [resolvable:$true] %s150_s12 }
  0x29   :  { %v160_v9 = vld [vmem:[%s346_s2] ss:$0 sm:$0xff]  ;;  %s242_s2 = scalar_lea.vmem %s151_s12, 384  ;;  %p247_p3 = scmp.lt.s32.totalorder %s151_s12, %s151_s12 }
  0x2a   :  { %180 = vmatpush3.bf16.msra.mxu0 %v179_v5  ;;  %p243_p2 = scmp.ne.s32.totalorder %s151_s12, %s242_s2  ;;  %p248_p4 = scmp.lt.s32.totalorder %s242_s2, %s242_s2 }
  0x2b   :  { %181 = vmatprep.subr.bf16.mxu0 %v274_v0 }
  0x2c   :  { %p249_p5 = por %p248_p4, %p247_p3 }
  0x2e   :  { %183 = vmatpush3.bf16.msra.mxu0 %v182_v7  ;;  %p250_p6 = pnand %p249_p5, %p243_p2 }
  0x31   :  { %176 = vmatmul.mubr.msk.f32.vlgmr.msra.gmra.mrb[0].mxu0 %vm53_vm1, %v41_v8 }
 0x104   :  { %v123_v10 = vpop.f32.mrb[0].mxu0 }
 0x105   :  { %v124_v11 = vadd.f32 %v160_v9, %v123_v10  ;;  %v177_v12 = vpop.f32.mrb[1].mxu0 }
 0x107   :  { %v127_v13 = vand.u32 2147483647, %v124_v11  ;;  %141 = vst [vmem:[#allocation7] sm:$0xff] %v124_v11  ;;  %vm134_vm2 = vcmp.ge.f32.partialorder %v124_v11, 0.0  ;;  %v137_v21 = vmax.f32 %v124_v11, 0.0 }
 0x109   :  { %v128_v14 = vsub.f32 0.0, %v127_v13 }
 0x10b   :  { %v129_v15 = vmul.f32 1.442695, %v128_v14 }
 0x10d   :  { %192 = vpow2.f32 %v129_v15 }
 0x117   :  { %v193_v16 = vpop.eup %192 }
 0x118   :  { %v131_v17 = vadd.f32 1.0, %v193_v16 }
 0x11a   :  { %194 = vrcp.f32 %v131_v17 }
 0x11b   :  { %196 = vlog2.f32 %v131_v17 }
 0x124   :  { %v195_v18 = vpop.eup %194 }
 0x125   :  { %v197_v19 = vpop.eup %196  ;;  %v135_v20 = vsub.f32 1.0, %v195_v18 }
 0x126   :  { %v139_v22 = vmul.f32 0.6931472, %v197_v19 }
 0x127   :  { %v136_v23 = vsel %vm134_vm2, %v195_v18, %v135_v20 }
 0x128   :  { %v140_v24 = vadd.f32 %v139_v22, %v137_v21  ;;  %142 = vst [vmem:[#allocation7 + $0x8] sm:$0xff] %v136_v23 }
 0x12a   :  { %143 = vst [vmem:[#allocation7 + $0x10] sm:$0xff] %v140_v24 }
 0x12b   :  { %253 = shalt.err (!%p250_p6)
}
 0x12c   :  { %s254_s15 = scalar_lea.hbm %s347_s3, 384 }
 0x12d   :  { %p255_p7 = scmp.ne.s32.totalorder %s347_s3, %s254_s15  ;;  %p258_p8 = scmp.lt.u32.totalorder %s254_s15, %s347_s3 }
 0x12f   :  { %p260_p9 = pnand %p258_p8, %p255_p7 }
 0x131   :  { %263 = shalt.err (!%p260_p9)
}
 0x132   :  { %153 = dma.vmem_to_hbm [thread:$0]  %s151_s12, 384, %s347_s3, [#allocation4]  }
 0x133   :  { %268 = dma.done.wait [#allocation4], 384  }
 0x134   :  { %269 = vsyncadd [#allocation4], 4294966912 }
 0x135   :  { %157 = vsyncpa [#allocation3], 1 }
 0x136   :  { %158 = vsyncpa [#allocation6], 1 }
 0x137   :  { %159 = vsyncpa [#allocation4], 1 }

</bundles_post_ra>
